<compile_context>
chip_gen: v7x
topology: tpu7x:2x2x1
jax: 0.10.0
libtpu: 0.0.40
codegen_flags: <defaults>
</compile_context>

<pallas_src>
import jax
import jax.numpy as jnp
from jax import lax
from jax.experimental import pallas as pl
from jax.experimental.pallas import tpu as pltpu

H = 64            # hidden width of the dense block (matches the PyTorch module)
NHEADS = 3        # logp, qed, sas
HEAD_ROWS = 8     # packed heads padded to a full sublane group (3 real + 5 zero rows)
BN_EPS = 1e-5


def _round_up(x, m):
    return ((x + m - 1) // m) * m


def _choose_tile(B):
    """Batch-tile size: one full tile for small B, big (multiple-of-128) tiles with
    >=2 grid steps for large B (megacore split on v7x, step-overhead amortization)."""
    if B <= 1024:
        return B                                   # single full-array tile, no padding
    return min(4096, _round_up(pl.cdiv(B, 2), 128))


def predictor_kernel(x_ref, w1_ref, b1_ref, w2_ref, b2_ref, wh_ref, bh_ref, out_ref):
    # ---- dense block (dropout = identity in eval mode) ----
    x = x_ref[...]                                                        # (TB, L) f32
    h1 = jnp.dot(x, w1_ref[...], preferred_element_type=jnp.float32) + b1_ref[...]
    h1 = jnp.maximum(h1, 0.0)                                             # ReLU
    h2 = jnp.dot(h1, w2_ref[...], preferred_element_type=jnp.float32) + b2_ref[...]
    h2 = jnp.maximum(h2, 0.0)                                             # ReLU

    # ---- BatchNorm (folded into weights) + packed heads, transposed output ----
    # (HEAD_ROWS, H) x (TB, H) contracting on H -> (HEAD_ROWS, TB): batch on the lane
    # axis, lane-dense writeback, no explicit transpose of the activations.
    heads = lax.dot_general(wh_ref[...], h2,
                            dimension_numbers=(((1,), (1,)), ((), ())),
                            preferred_element_type=jnp.float32)
    out_ref[...] = heads + bh_ref[...]                                    # (+ (8,1) bias)


def predictor_forward(latent, params):
    """latent: (B, L) float32.  Returns (logp, qed, sas), each (B, 1)."""
    B, L = latent.shape
    w1, b1, w2, b2, gamma, beta, r_mean, r_var, wh, bh = params

    # ---- fold eval-mode BatchNorm1d into the packed head matmul ----
    s = gamma * lax.rsqrt(r_var + BN_EPS)            # (1, H)
    t = beta - r_mean * s                            # (1, H)
    wh_f = wh * jnp.transpose(s)                     # (H, 3)
    bh_f = t @ wh + bh                               # (1, 3)

    # ---- pack heads as (8, H) rows (3 real + 5 zero) for the transposed matmul ----
    wh8 = jnp.zeros((HEAD_ROWS, H), jnp.float32).at[:NHEADS, :].set(jnp.transpose(wh_f))
    bh8 = jnp.zeros((HEAD_ROWS, 1), jnp.float32).at[:NHEADS, 0].set(bh_f[0])

    # ---- batch tiling: no wrapper-side padding; ragged final block handled by Pallas ----
    TB = _choose_tile(B)
    grid = (pl.cdiv(B, TB),)

    cost = pl.CostEstimate(
        flops=2 * B * (L * L + L * H + H * HEAD_ROWS),
        transcendentals=0,
        bytes_accessed=4 * (B * L + L * L + L + L * H + H
                            + HEAD_ROWS * H + HEAD_ROWS + HEAD_ROWS * B),
    )

    out = pl.pallas_call(
        predictor_kernel,
        out_shape=jax.ShapeDtypeStruct((HEAD_ROWS, B), jnp.float32),
        grid=grid,
        in_specs=[
            pl.BlockSpec((TB, L), lambda i: (i, 0)),         # latent tile (streamed)
            pl.BlockSpec((L, L), lambda i: (0, 0)),          # w1 (in, out) — resident
            pl.BlockSpec((1, L), lambda i: (0, 0)),          # b1
            pl.BlockSpec((L, H), lambda i: (0, 0)),          # w2 (in, out) — resident
            pl.BlockSpec((1, H), lambda i: (0, 0)),          # b2
            pl.BlockSpec((HEAD_ROWS, H), lambda i: (0, 0)),  # packed heads (BN folded)
            pl.BlockSpec((HEAD_ROWS, 1), lambda i: (0, 0)),  # packed head biases
        ],
        out_specs=pl.BlockSpec((HEAD_ROWS, TB), lambda i: (0, i)),
        compiler_params=pltpu.CompilerParams(
            dimension_semantics=("parallel",),               # megacore split on v7x
        ),
        cost_estimate=cost,
    )(latent, w1, b1, w2, b2, wh8, bh8)

    heads = jnp.transpose(out[:NHEADS, :])                   # (B, 3) — tiny XLA transpose
    logp = heads[:, 0:1]
    qed = heads[:, 1:2]
    sas = heads[:, 2:3]
    return logp, qed, sas


def init_params(key, L):
    """Deterministic parameter init (PyTorch-Linear-style uniform fan-in bounds)."""
    ks = jax.random.split(key, 10)

    def linear(kw, kb, fan_in, fan_out):
        bound = 1.0 / jnp.sqrt(jnp.float32(fan_in))
        w = jax.random.uniform(kw, (fan_in, fan_out), jnp.float32, -bound, bound)
        b = jax.random.uniform(kb, (1, fan_out), jnp.float32, -bound, bound)
        return w, b

    w1, b1 = linear(ks[0], ks[1], L, L)       # dense[0]: Linear(L, L)
    w2, b2 = linear(ks[2], ks[3], L, H)       # dense[3]: Linear(L, H)

    # BatchNorm1d(H) parameters / running stats (non-trivial but deterministic).
    gamma = 1.0 + 0.1 * jax.random.normal(ks[4], (1, H), jnp.float32)
    beta = 0.1 * jax.random.normal(ks[5], (1, H), jnp.float32)
    r_mean = 0.05 * jax.random.normal(ks[6], (1, H), jnp.float32)
    r_var = 1.0 + 0.1 * jax.random.uniform(ks[7], (1, H), jnp.float32)

    # Three heads Linear(H, 1), packed column-wise -> (H, 3), (1, 3).
    wh_logp, bh_logp = linear(jax.random.fold_in(ks[8], 0), jax.random.fold_in(ks[9], 0), H, 1)
    wh_qed, bh_qed = linear(jax.random.fold_in(ks[8], 1), jax.random.fold_in(ks[9], 1), H, 1)
    wh_sas, bh_sas = linear(jax.random.fold_in(ks[8], 2), jax.random.fold_in(ks[9], 2), H, 1)
    wh = jnp.concatenate([wh_logp, wh_qed, wh_sas], axis=1)
    bh = jnp.concatenate([bh_logp, bh_qed, bh_sas], axis=1)

    return (w1, b1, w2, b2, gamma, beta, r_mean, r_var, wh, bh)


def reference_forward(latent, params):
    """Pure-JAX reference mirroring the PyTorch eval-mode forward (BN not folded)."""
    w1, b1, w2, b2, gamma, beta, r_mean, r_var, wh, bh = params
    h = jnp.maximum(latent @ w1 + b1, 0.0)
    h = jnp.maximum(h @ w2 + b2, 0.0)
    h = (h - r_mean) / jnp.sqrt(r_var + BN_EPS) * gamma + beta
    out = h @ wh + bh
    return out[:, 0:1], out[:, 1:2], out[:, 2:3]


if __name__ == "__main__":
    B, L = 8, 32
    key = jax.random.PRNGKey(0)
    k_x, k_p = jax.random.split(key)

    latent = jax.random.normal(k_x, (B, L), dtype=jnp.float32)
    params = init_params(k_p, L)

    logp, qed, sas = predictor_forward(latent, params)
    jax.block_until_ready((logp, qed, sas))

    # sanity check against pure-JAX (unfused-BN) reference
    ref_logp, ref_qed, ref_sas = reference_forward(latent, params)
    assert logp.shape == (B, 1) and qed.shape == (B, 1) and sas.shape == (B, 1)
    assert jnp.allclose(logp, ref_logp, atol=1e-4, rtol=1e-4)
    assert jnp.allclose(qed, ref_qed, atol=1e-4, rtol=1e-4)
    assert jnp.allclose(sas, ref_sas, atol=1e-4, rtol=1e-4)

    print("KERNEL_OK")
</pallas_src>

<mosaic_0001>
module attributes {stable_mosaic.version = 11 : i64} {
  func.func @predictor_kernel(%arg0: i32, %arg1: memref<8x32xf32, #tpu.memory_space<vmem>>, %arg2: memref<32x32xf32, #tpu.memory_space<vmem>>, %arg3: memref<1x32xf32, #tpu.memory_space<vmem>>, %arg4: memref<32x64xf32, #tpu.memory_space<vmem>>, %arg5: memref<1x64xf32, #tpu.memory_space<vmem>>, %arg6: memref<8x64xf32, #tpu.memory_space<vmem>>, %arg7: memref<8x1xf32, #tpu.memory_space<vmem>>, %arg8: memref<8x8xf32, #tpu.memory_space<vmem>>) attributes {dimension_semantics = [#tpu.dimension_semantics<parallel>], iteration_bounds = array<i64: 1>, scalar_prefetch = 0 : i64, scratch_operands = 0 : i64, tpu.core_type = #tpu.core_type<tc>, window_params = [{transform_indices = @transform_0, window_bounds = array<i64: 8, 32>}, {pipeline_mode = #tpu.pipeline_mode<synchronous>, transform_indices = @transform_1, window_bounds = array<i64: 32, 32>}, {pipeline_mode = #tpu.pipeline_mode<synchronous>, transform_indices = @transform_2, window_bounds = array<i64: 1, 32>}, {pipeline_mode = #tpu.pipeline_mode<synchronous>, transform_indices = @transform_3, window_bounds = array<i64: 32, 64>}, {pipeline_mode = #tpu.pipeline_mode<synchronous>, transform_indices = @transform_4, window_bounds = array<i64: 1, 64>}, {pipeline_mode = #tpu.pipeline_mode<synchronous>, transform_indices = @transform_5, window_bounds = array<i64: 8, 64>}, {pipeline_mode = #tpu.pipeline_mode<synchronous>, transform_indices = @transform_6, window_bounds = array<i64: 8, 1>}, {transform_indices = @transform_7, window_bounds = array<i64: 8, 8>}]} {
    %c0 = arith.constant 0 : index
    %c0_0 = arith.constant 0 : index
    %0 = vector.load %arg1[%c0, %c0_0] : memref<8x32xf32, #tpu.memory_space<vmem>>, vector<8x32xf32>
    %c0_1 = arith.constant 0 : index
    %c0_2 = arith.constant 0 : index
    %1 = vector.load %arg2[%c0_1, %c0_2] : memref<32x32xf32, #tpu.memory_space<vmem>>, vector<32x32xf32>
    %cst = arith.constant dense<0.000000e+00> : vector<8x32xf32>
    %2 = tpu.matmul %0, %1, %cst {dimension_numbers = #tpu.dot_dimension_numbers<[1], [0], [0], [1], [0, 0, 1, 1], [], []>} : vector<8x32xf32>, vector<32x32xf32>, vector<8x32xf32> -> vector<8x32xf32>
    %c0_3 = arith.constant 0 : index
    %c0_4 = arith.constant 0 : index
    %3 = vector.load %arg3[%c0_3, %c0_4] : memref<1x32xf32, #tpu.memory_space<vmem>>, vector<1x32xf32>
    %4 = vector.broadcast %3 : vector<1x32xf32> to vector<8x32xf32>
    %5 = arith.addf %2, %4 : vector<8x32xf32>
    %cst_5 = arith.constant 0.000000e+00 : f32
    %6 = vector.broadcast %cst_5 : f32 to vector<8x32xf32>
    %7 = arith.maximumf %5, %6 : vector<8x32xf32>
    %c0_6 = arith.constant 0 : index
    %c0_7 = arith.constant 0 : index
    %8 = vector.load %arg4[%c0_6, %c0_7] : memref<32x64xf32, #tpu.memory_space<vmem>>, vector<32x64xf32>
    %cst_8 = arith.constant dense<0.000000e+00> : vector<8x64xf32>
    %9 = tpu.matmul %7, %8, %cst_8 {dimension_numbers = #tpu.dot_dimension_numbers<[1], [0], [0], [1], [0, 0, 1, 1], [], []>} : vector<8x32xf32>, vector<32x64xf32>, vector<8x64xf32> -> vector<8x64xf32>
    %c0_9 = arith.constant 0 : index
    %c0_10 = arith.constant 0 : index
    %10 = vector.load %arg5[%c0_9, %c0_10] : memref<1x64xf32, #tpu.memory_space<vmem>>, vector<1x64xf32>
    %11 = vector.broadcast %10 : vector<1x64xf32> to vector<8x64xf32>
    %12 = arith.addf %9, %11 : vector<8x64xf32>
    %cst_11 = arith.constant 0.000000e+00 : f32
    %13 = vector.broadcast %cst_11 : f32 to vector<8x64xf32>
    %14 = arith.maximumf %12, %13 : vector<8x64xf32>
    %c0_12 = arith.constant 0 : index
    %c0_13 = arith.constant 0 : index
    %15 = vector.load %arg6[%c0_12, %c0_13] : memref<8x64xf32, #tpu.memory_space<vmem>>, vector<8x64xf32>
    %cst_14 = arith.constant dense<0.000000e+00> : vector<8x8xf32>
    %16 = tpu.matmul %15, %14, %cst_14 {dimension_numbers = #tpu.dot_dimension_numbers<[1], [1], [0], [0], [0, 0, 1, 0], [], []>} : vector<8x64xf32>, vector<8x64xf32>, vector<8x8xf32> -> vector<8x8xf32>
    %c0_15 = arith.constant 0 : index
    %c0_16 = arith.constant 0 : index
    %17 = vector.load %arg7[%c0_15, %c0_16] : memref<8x1xf32, #tpu.memory_space<vmem>>, vector<8x1xf32>
    %18 = vector.broadcast %17 : vector<8x1xf32> to vector<8x8xf32>
    %19 = arith.addf %16, %18 : vector<8x8xf32>
    %c0_17 = arith.constant 0 : index
    %c0_18 = arith.constant 0 : index
    %20 = vector.load %arg8[%c0_17, %c0_18] : memref<8x8xf32, #tpu.memory_space<vmem>>, vector<8x8xf32>
    tpu.vector_store %arg8[%c0_17, %c0_18], %19 {strides = array<i32>} : memref<8x8xf32, #tpu.memory_space<vmem>>, vector<8x8xf32>,
    return
  }
  func.func @transform_0(%arg0: i32) -> (i32, i32) {
    %c0_i32 = arith.constant 0 : i32
    %c0_i32_0 = arith.constant 0 : i32
    return %arg0, %c0_i32 : i32, i32
  }
  func.func @transform_1(%arg0: i32) -> (i32, i32) {
    %c0_i32 = arith.constant 0 : i32
    %c0_i32_0 = arith.constant 0 : i32
    %c0_i32_1 = arith.constant 0 : i32
    return %c0_i32, %c0_i32_0 : i32, i32
  }
  func.func @transform_2(%arg0: i32) -> (i32, i32) {
    %c0_i32 = arith.constant 0 : i32
    %c0_i32_0 = arith.constant 0 : i32
    %c0_i32_1 = arith.constant 0 : i32
    return %c0_i32, %c0_i32_0 : i32, i32
  }
  func.func @transform_3(%arg0: i32) -> (i32, i32) {
    %c0_i32 = arith.constant 0 : i32
    %c0_i32_0 = arith.constant 0 : i32
    %c0_i32_1 = arith.constant 0 : i32
    return %c0_i32, %c0_i32_0 : i32, i32
  }
  func.func @transform_4(%arg0: i32) -> (i32, i32) {
    %c0_i32 = arith.constant 0 : i32
    %c0_i32_0 = arith.constant 0 : i32
    %c0_i32_1 = arith.constant 0 : i32
    return %c0_i32, %c0_i32_0 : i32, i32
  }
  func.func @transform_5(%arg0: i32) -> (i32, i32) {
    %c0_i32 = arith.constant 0 : i32
    %c0_i32_0 = arith.constant 0 : i32
    %c0_i32_1 = arith.constant 0 : i32
    return %c0_i32, %c0_i32_0 : i32, i32
  }
  func.func @transform_6(%arg0: i32) -> (i32, i32) {
    %c0_i32 = arith.constant 0 : i32
    %c0_i32_0 = arith.constant 0 : i32
    %c0_i32_1 = arith.constant 0 : i32
    return %c0_i32, %c0_i32_0 : i32, i32
  }
  func.func @transform_7(%arg0: i32) -> (i32, i32) {
    %c0_i32 = arith.constant 0 : i32
    %c0_i32_0 = arith.constant 0 : i32
    return %c0_i32, %arg0 : i32, i32
  }
}

</mosaic_0001>

<bundles_post_ra>
// kernel: tpu_custom_call.1
= control target key start
LH: loop header
LB: loop body
LE: loop exit
PB: predicated region body
PF: predicated region fallthrough
CT: control target
= control target key end

     0   :  { %12 = vsyncpa [#allocation3], 0  ;;  %s622_s0 = inlined_call_operand.vmem [shape: f32[8,32], index: 0, kind: input, shape index: {}]   ;;  %s623_s1 = inlined_call_operand.hbm [shape: f32[32,32], index: 1, kind: input, shape index: {}]   ;;  %s624_s2 = inlined_call_operand.hbm [shape: f32[1,32], index: 2, kind: input, shape index: {}]   ;;  %s625_s3 = inlined_call_operand.hbm [shape: f32[32,64], index: 3, kind: input, shape index: {}]   ;;  %s626_s4 = inlined_call_operand.vmem [shape: f32[1,64], index: 4, kind: input, shape index: {}]   ;;  %s627_s5 = inlined_call_operand.vmem [shape: f32[8,64], index: 5, kind: input, shape index: {}]   ;;  %s628_s6 = inlined_call_operand.vmem [shape: f32[8,1], index: 6, kind: input, shape index: {}]   ;;  %s629_s7 = inlined_call_operand.hbm [shape: f32[8,8], index: 7, kind: output, shape index: {}]  }
   0x1   :  { %13 = vsyncpa [#allocation6], 0 }
   0x2   :  { %14 = vsyncpa [#allocation4], 0  ;;  %s502_s24 = smov [#allocation5]   ;;  %s503_s26 = smov [#allocation2]  }
   0x3   :  { %s35_s25 = sshll.u32 %s502_s24, 4  ;;  %s22_s27 = sshll.u32 %s503_s26, 4  ;;  %s36_s25 = int_to_ptr.vmem [resolvable:$true] %s35_s25  ;;  %s552_s27 = int_to_ptr.vmem [resolvable:$true] %s22_s27 }
   0x4   :  { %s408_s30 = scalar_lea.hbm %s624_s2, 16 }
   0x5   :  { %p409_p0 = scmp.ne.s32.totalorder %s624_s2, %s408_s30  ;;  %p412_p1 = scmp.lt.u32.totalorder %s408_s30, %s624_s2 }
   0x7   :  { %p414_p2 = pnand %p412_p1, %p409_p0 }
   0x9   :  { %417 = shalt.err (!%p414_p2)
}
   0xa   :  { %s418_s12 = scalar_lea.vmem %s36_s25, 16  ;;  %s422_s13 = scalar_lea.vmem %s36_s25, 32 }
   0xb   :  { %p419_p3 = scmp.ne.s32.totalorder %s36_s25, %s418_s12  ;;  %p423_p4 = scmp.lt.s32.totalorder %s36_s25, %s36_s25 }
   0xc   :  { %p424_p5 = scmp.lt.s32.totalorder %s422_s13, %s418_s12 }
   0xe   :  { %p425_p6 = por %p424_p5, %p423_p4 }
  0x10   :  { %p426_p7 = pnand %p425_p6, %p419_p3 }
  0x12   :  { %429 = shalt.err (!%p426_p7)
}
  0x13   :  { %38 = dma.hbm_to_vmem [thread:$0]  %s624_s2, 16, %s36_s25, [#allocation6]  }
  0x14   :  { %s430_s18 = scalar_lea.hbm %s623_s1, 512 }
  0x15   :  { %p431_p8 = scmp.ne.s32.totalorder %s623_s1, %s430_s18  ;;  %p434_p9 = scmp.lt.u32.totalorder %s430_s18, %s623_s1 }
  0x17   :  { %p436_p10 = pnand %p434_p9, %p431_p8 }
  0x19   :  { %439 = shalt.err (!%p436_p10)
}
  0x1a   :  { %s440_s23 = scalar_lea.vmem %s552_s27, 512  ;;  %p445_p12 = scmp.lt.s32.totalorder %s552_s27, %s552_s27 }
  0x1b   :  { %p441_p11 = scmp.ne.s32.totalorder %s552_s27, %s440_s23  ;;  %p446_p13 = scmp.lt.s32.totalorder %s440_s23, %s440_s23 }
  0x1d   :  { %p447_p0 = por %p446_p13, %p445_p12 }
  0x1f   :  { %p448_p1 = pnand %p447_p0, %p441_p11 }
  0x21   :  { %451 = shalt.err (!%p448_p1)
}
  0x22   :  { %s504_s2 = smov 128   ;;  %s505_s24 = smov 8  }
  0x23   :  { %28 = dma.hbm_to_vmem [thread:$0]  %s623_s1, 512, %s552_s27, [#allocation3], %s504_s2, %s504_s2, %s505_s24  }
  0x24   :  { %s506_s28 = smov [#allocation7]   ;;  %s452_s9 = scalar_lea.hbm %s625_s3, 512 }
  0x25   :  { %s44_s29 = sshll.u32 %s506_s28, 4  ;;  %p453_p2 = scmp.ne.s32.totalorder %s625_s3, %s452_s9  ;;  %s45_s29 = int_to_ptr.vmem [resolvable:$true] %s44_s29 }
  0x26   :  { %p456_p3 = scmp.lt.u32.totalorder %s452_s9, %s625_s3 }
  0x28   :  { %p458_p4 = pnand %p456_p3, %p453_p2 }
  0x2a   :  { %461 = shalt.err (!%p458_p4)
}
  0x2b   :  { %s462_s14 = scalar_lea.vmem %s45_s29, 512  ;;  %p467_p6 = scmp.lt.s32.totalorder %s45_s29, %s45_s29 }
  0x2c   :  { %p463_p5 = scmp.ne.s32.totalorder %s45_s29, %s462_s14  ;;  %p468_p7 = scmp.lt.s32.totalorder %s462_s14, %s462_s14 }
  0x2e   :  { %p469_p8 = por %p468_p7, %p467_p6 }
  0x30   :  { %p470_p9 = pnand %p469_p8, %p463_p5 }
  0x32   :  { %473 = shalt.err (!%p470_p9)
}
  0x33   :  { %50 = dma.hbm_to_vmem [thread:$0]  %s625_s3, 512, %s45_s29, [#allocation6], %s504_s2, %s504_s2, %s505_s24  }
  0x34   :  { %496 = dma.done.wait [#allocation3], 512  }
  0x35   :  { %497 = vsyncadd [#allocation3], 4294966784 }
  0x36   :  { %498 = dma.done.wait [#allocation6], 528  }
  0x37   :  { %499 = vsyncadd [#allocation6], 4294966768  ;;  %v507_v0 = vmov 0.0|0.0   ;;  %vm508_vm0 = vmmov 0   ;;  %v509_v1 = vmov 0.0   ;;  %v67_v2 = vld [vmem:[#allocation2] sm:$0xff] }
  0x38   :  { %385 = vmatprep.subr.bf16.mxu0 %v507_v0  ;;  %366 = vmatprep.mubr.msk.f32.mxu0 %vm508_vm0, %v509_v1  ;;  %v68_v3 = vld [vmem:[#allocation2 + $0x8] sm:$0xff]  ;;  %v69_v4 = vld [vmem:[#allocation2 + $0x10] sm:$0xff]  ;;  %v70_v6 = vld [vmem:[#allocation2 + $0x18] sm:$0xff]  ;;  %vm78_vm1 = vcmask 261120   ;;  %v510_v21 = vmov 0   ;;  %vm245_vm2 = vcmask 523264  }
  0x39   :  { %391 = vmatprep.subr.bf16.mxu1 %v507_v0  ;;  %377 = vmatprep.mubr.msk.f32.mxu1 %vm508_vm0, %v509_v1  ;;  %v386_v5 = vpack.c.bf16 %v68_v3, %v67_v2  ;;  %v153_v7 = vld [vmem:[#allocation7] sm:$0xff]  ;;  %v154_v8 = vld [vmem:[#allocation7 + $0x8] sm:$0xff]  ;;  %v389_v9 = vpack.c.bf16 %v70_v6, %v69_v4  ;;  %v155_v12 = vld [vmem:[#allocation7 + $0x10] sm:$0xff]  ;;  %vm322_vm3 = vcmask 64512  }
  0x3a   :  { %v392_v10 = vpack.c.bf16 %v154_v8, %v153_v7  ;;  %v66_v11 = vld [vmem:[%s622_s0] sm:$0xff]  ;;  %407 = vset.pattern.permute.xlu0 %v510_v21 }
  0x3b   :  { %387 = vmatpush3.bf16.msra.mxu0 %v386_v5  ;;  %v156_v13 = vld [vmem:[#allocation7 + $0x18] sm:$0xff] }
  0x3c   :  { %388 = vmatprep.subr.bf16.mxu0 %v507_v0  ;;  %393 = vmatpush3.bf16.msra.mxu1 %v392_v10  ;;  %v395_v14 = vpack.c.bf16 %v156_v13, %v155_v12  ;;  %v340_v15 = vld [vmem:[#allocation5] ss:$0 sm:$0xff] }
  0x3d   :  { %394 = vmatprep.subr.bf16.mxu1 %v507_v0  ;;  %v239_v20 = vld [vmem:[%s628_s6] sm:$0xff]  ;;  %s511_s6 = smov [#allocation8]  }
  0x3e   :  { %242 = vperm.xlu0 %407, %v239_v20   ;;  %v342_v22 = vld [vmem:[%s626_s4] ss:$0 sm:$0xff]  ;;  %s330_s21 = sshll.u32 %s511_s6, 4  ;;  %s331_s21 = int_to_ptr.vmem [resolvable:$true] %s330_s21 }
  0x3f   :  { %390 = vmatpush3.bf16.msra.mxu0 %v389_v9  ;;  %v238_v27 = vld [vmem:[%s627_s5] sm:$0xff]  ;;  %s474_s4 = scalar_lea.vmem %s331_s21, 128  ;;  %p479_p11 = scmp.lt.s32.totalorder %s331_s21, %s331_s21 }
  0x40   :  { %380 = vmatprep.subr.mxu0 %v509_v1  ;;  %396 = vmatpush3.bf16.msra.mxu1 %v395_v14  ;;  %p475_p10 = scmp.ne.s32.totalorder %s331_s21, %s474_s4  ;;  %p480_p12 = scmp.lt.s32.totalorder %s474_s4, %s474_s4 }
  0x42   :  { %367 = vmatmul.mubr.msk.f32.vlgmr.msra.gmra.mrb[0].mxu0 %vm78_vm1, %v66_v11  ;;  %p481_p13 = por %p480_p12, %p479_p11 }
  0x43   :  { %382 = vmatprep.mubr.msk.f32.mxu0 %vm508_vm0, %v509_v1 }
  0x44   :  { %p482_p0 = pnand %p481_p13, %p475_p10 }
  0xbd   :  { %v243_v28 = vpop.permute.xlu0 %242 }
 0x115   :  { %v148_v16 = vpop.f32.mrb[0].mxu0 }
 0x116   :  { %v149_v17 = vadd.f32 %v340_v15, %v148_v16  ;;  %v368_v18 = vpop.f32.mrb[1].mxu0 }
 0x118   :  { %v152_v19 = vmax.f32 %v149_v17, 0.0 }
 0x11a   :  { %378 = vmatmul.mubr.msk.f32.vlgmr.msra.gmra.mrb[0].mxu1 %vm78_vm1, %v152_v19 }
 0x1ed   :  { %v233_v23 = vpop.f32.mrb[0].mxu1 }
 0x1ee   :  { %v234_v24 = vadd.f32 %v342_v22, %v233_v23  ;;  %v379_v25 = vpop.f32.mrb[1].mxu1 }
 0x1f0   :  { %v237_v26 = vmax.f32 %v234_v24, 0.0 }
 0x1f2   :  { %381 = vmatpush3.xpose.msk.msra.mxu0 %vm245_vm2, %v237_v26 }
 0x1f5   :  { %383 = vmatmul.mubr.msk.f32.vlgmr.msra.gmra.mrb[2].mxu0 %vm245_vm2, %v238_v27 }
 0x2c8   :  { %v318_v29 = vpop.f32.mrb[2].mxu0 }
 0x2c9   :  { %v319_v30 = vadd.f32 %v318_v29, %v243_v28  ;;  %v384_v31 = vpop.f32.mrb[3].mxu0 }
 0x2cb   :  { %323 = vst.msk [vmem:[#allocation8] sm:$0xff] %vm322_vm3, %v319_v30 }
 0x2cc   :  { %485 = shalt.err (!%p482_p0)
}
 0x2cd   :  { %s486_s5 = scalar_lea.hbm %s629_s7, 128 }
 0x2ce   :  { %p487_p1 = scmp.ne.s32.totalorder %s629_s7, %s486_s5  ;;  %p490_p2 = scmp.lt.u32.totalorder %s486_s5, %s629_s7 }
 0x2d0   :  { %p492_p3 = pnand %p490_p2, %p487_p1 }
 0x2d2   :  { %495 = shalt.err (!%p492_p3)
}
 0x2d3   :  { %333 = dma.vmem_to_hbm [thread:$0]  %s331_s21, 128, %s629_s7, [#allocation4]  }
 0x2d4   :  { %500 = dma.done.wait [#allocation4], 128  }
 0x2d5   :  { %501 = vsyncadd [#allocation4], 4294967168 }
 0x2d6   :  { %337 = vsyncpa [#allocation3], 1 }
 0x2d7   :  { %338 = vsyncpa [#allocation6], 1 }
 0x2d8   :  { %339 = vsyncpa [#allocation4], 1 }

</bundles_post_ra>
